<compile_context>
chip_gen: v6e
topology: v6e:2x2x1
jax: 0.10.0
libtpu: 0.0.40
codegen_flags: <defaults>
</compile_context>

<pallas_src>
import math
from functools import partial

import jax
import jax.numpy as jnp
from jax.experimental import pallas as pl
from jax.experimental.pallas import tpu as pltpu

_SQRT_2_OVER_PI = math.sqrt(2.0 / math.pi)


def _gelu_tanh(x):
    # Matches the PyTorch GELU module (tanh approximation).
    return 0.5 * x * (1.0 + jnp.tanh(_SQRT_2_OVER_PI * (x + 0.044715 * x * x * x)))


def _ffn_kernel(x_ref, w1_ref, b1_ref, w2_ref, b2_ref, o_ref, acc_ref, *, th):
    # x_ref: (tm, E); w1_ref: (E, th); b1_ref: (1, H) untiled, sliced here
    # w2_ref: (th, E); b2_ref: (1, E); o_ref/acc_ref: (tm, E)
    k = pl.program_id(1)

    @pl.when(k == 0)
    def _():
        acc_ref[...] = jnp.zeros_like(acc_ref)

    # First projection (this hidden slice) + fused GELU, f32 accumulation.
    h = jnp.dot(x_ref[...], w1_ref[...], preferred_element_type=jnp.float32)
    start = k * th
    if th % 128 == 0:
        start = pl.multiple_of(start, 128)
    h = h + b1_ref[:, pl.ds(start, th)].astype(jnp.float32)
    g = _gelu_tanh(h)

    # Second projection: accumulate partial products over hidden tiles.
    # (g is cast to the weight dtype; bf16 weights diverge slightly from an
    #  all-f32 reference -- covered by the test tolerance.)
    acc_ref[...] += jnp.dot(
        g.astype(w2_ref.dtype), w2_ref[...], preferred_element_type=jnp.float32
    )

    @pl.when(k == pl.num_programs(1) - 1)
    def _():
        o_ref[...] = (acc_ref[...] + b2_ref[...].astype(jnp.float32)).astype(
            o_ref.dtype
        )


def _vmem_capacity_bytes():
    try:
        info = pltpu.get_tpu_info()
        cap = int(getattr(info, "vmem_capacity_bytes", 0))
        if cap > 0:
            return cap
    except Exception:
        pass
    return 64 * 1024 * 1024  # conservative fallback (v7x per-core VMEM)


def _pick_tiles(rows, emb, hidden, x_itemsize, w_itemsize, capacity):
    """VMEM-aware (tm, th, vmem_limit) selection.

    Per-step footprint model (bytes):
      x + out blocks (double-buffered), f32 accumulator, f32 h/g intermediates
      -> scale with tm; W1/W2 blocks (double-buffered) + biases -> constant.
    """
    budget = int(capacity * 0.80)          # ~100 MiB on v5e/v6e, ~51 MiB on v7x
    two_core = capacity <= (64 << 20)      # v7x: 64 MiB/TC, 2 TensorCores/chip
    max_th = 512 if not two_core else 256  # smaller weight slices on v7x

    # Hidden-tile candidates: multiples of 128 that divide H (descending).
    cands = [t for t in range(max_th, 127, -128) if hidden % t == 0]
    if not cands:
        cands = [t for t in range(512, 127, -128) if hidden % t == 0]
    if not cands:
        # TODO(synk): hidden not a multiple of 128 -> full-extent weight blocks;
        # huge models in this corner would additionally need an emb grid axis.
        cands = [hidden]

    def _const(th):
        w = 2 * 2 * emb * th * w_itemsize          # W1 + W2, double-buffered
        b = 2 * (hidden + emb) * w_itemsize        # b1 (untiled) + b2
        return w + b

    def _per_row(th):
        io = 4 * emb * x_itemsize                  # x + out, double-buffered
        acc = 4 * emb                              # f32 accumulator
        interm = 8 * th                            # f32 h and g
        return io + acc + interm

    th = cands[-1]
    for t in cands:
        if _const(t) + 8 * _per_row(t) <= budget:
            th = t
            break

    avail = budget - _const(th)
    tm = 8
    if avail > 0:
        tm = max(8, min(1024, (avail // _per_row(th)) // 8 * 8))

    # v7x: keep >= 2 row tiles so the "parallel" axis shards over both cores.
    if two_core and rows >= 16:
        half = (((rows + 1) // 2) + 7) // 8 * 8
        if half < rows:
            tm = min(tm, half)

    if tm >= rows:
        tm = rows  # full-extent row block (always a legal block shape)

    footprint = tm * _per_row(th) + _const(th)
    if footprint <= budget:
        vmem_limit = budget
    else:
        vmem_limit = min(capacity - (2 << 20), footprint + (4 << 20))
    return tm, th, int(vmem_limit)


def feedforward_pallas(x, w1, b1, w2, b2):
    """x: [..., E]; w1: [E, H]; b1: [H]; w2: [H, E]; b2: [E]."""
    orig_shape = x.shape
    emb = orig_shape[-1]
    hidden = w1.shape[1]
    rows = math.prod(orig_shape[:-1]) if len(orig_shape) > 1 else 1

    x2d = x.reshape(rows, emb)
    b1_2d = b1.reshape(1, hidden)
    b2_2d = b2.reshape(1, emb)

    capacity = _vmem_capacity_bytes()
    tm, th, vmem_limit = _pick_tiles(
        rows, emb, hidden, x.dtype.itemsize, w1.dtype.itemsize, capacity
    )

    grid = (pl.cdiv(rows, tm), hidden // th)

    out2d = pl.pallas_call(
        partial(_ffn_kernel, th=th),
        out_shape=jax.ShapeDtypeStruct((rows, emb), x.dtype),
        grid_spec=pltpu.PrefetchScalarGridSpec(
            num_scalar_prefetch=0,
            grid=grid,
            in_specs=[
                pl.BlockSpec((tm, emb), lambda i, k: (i, 0)),      # x row tile
                pl.BlockSpec((emb, th), lambda i, k: (0, k)),      # W1 slice
                pl.BlockSpec((1, hidden), lambda i, k: (0, 0)),    # b1 (untiled)
                pl.BlockSpec((th, emb), lambda i, k: (k, 0)),      # W2 slice
                pl.BlockSpec((1, emb), lambda i, k: (0, 0)),       # b2
            ],
            out_specs=pl.BlockSpec((tm, emb), lambda i, k: (i, 0)),
            scratch_shapes=[pltpu.VMEM((tm, emb), jnp.float32)],
        ),
        compiler_params=pltpu.CompilerParams(
            dimension_semantics=("parallel", "arbitrary"),
            vmem_limit_bytes=vmem_limit,
        ),
    )(x2d, w1, b1_2d, w2, b2_2d)

    return out2d.reshape(orig_shape)


def feedforward_ref(x, w1, b1, w2, b2):
    xf = x.astype(jnp.float32)
    h = jnp.dot(xf, w1.astype(jnp.float32)) + b1.astype(jnp.float32)
    g = _gelu_tanh(h)
    out = jnp.dot(g, w2.astype(jnp.float32)) + b2.astype(jnp.float32)
    return out.astype(x.dtype)


if __name__ == "__main__":
    key = jax.random.PRNGKey(0)
    batch, seq, emb_dim = 2, 8, 32
    hidden = 4 * emb_dim

    k_x, k_w1, k_b1, k_w2, k_b2 = jax.random.split(key, 5)
    x = jax.random.normal(k_x, (batch, seq, emb_dim), dtype=jnp.float32)
    w1 = jax.random.normal(k_w1, (emb_dim, hidden), dtype=jnp.float32) / math.sqrt(
        emb_dim
    )
    b1 = jax.random.normal(k_b1, (hidden,), dtype=jnp.float32) * 0.01
    w2 = jax.random.normal(k_w2, (hidden, emb_dim), dtype=jnp.float32) / math.sqrt(
        hidden
    )
    b2 = jax.random.normal(k_b2, (emb_dim,), dtype=jnp.float32) * 0.01

    out = feedforward_pallas(x, w1, b1, w2, b2)
    out = jax.block_until_ready(out)

    ref = feedforward_ref(x, w1, b1, w2, b2)
    assert out.shape == x.shape and out.dtype == x.dtype
    # Tolerance covers MXU default-precision matmuls and the g->weight-dtype cast.
    assert jnp.allclose(out, ref, atol=2e-2, rtol=2e-2), float(
        jnp.max(jnp.abs(out - ref))
    )

    print("KERNEL_OK")
</pallas_src>

<mosaic_0001>
module attributes {stable_mosaic.version = 11 : i64} {
  func.func @_ffn_kernel(%arg0: i32, %arg1: i32, %arg2: memref<8x32xf32, #tpu.memory_space<vmem>>, %arg3: memref<32x128xf32, #tpu.memory_space<vmem>>, %arg4: memref<1x128xf32, #tpu.memory_space<vmem>>, %arg5: memref<128x32xf32, #tpu.memory_space<vmem>>, %arg6: memref<1x32xf32, #tpu.memory_space<vmem>>, %arg7: memref<8x32xf32, #tpu.memory_space<vmem>>, %arg8: memref<8x32xf32, #tpu.memory_space<vmem>>) attributes {dimension_semantics = [#tpu.dimension_semantics<parallel>, #tpu.dimension_semantics<arbitrary>], iteration_bounds = array<i64: 2, 1>, scalar_prefetch = 0 : i64, scratch_operands = 1 : i64, tpu.core_type = #tpu.core_type<tc>, window_params = [{transform_indices = @transform_0, window_bounds = array<i64: 8, 32>}, {transform_indices = @transform_1, window_bounds = array<i64: 32, 128>}, {pipeline_mode = #tpu.pipeline_mode<synchronous>, transform_indices = @transform_2, window_bounds = array<i64: 1, 128>}, {transform_indices = @transform_3, window_bounds = array<i64: 128, 32>}, {pipeline_mode = #tpu.pipeline_mode<synchronous>, transform_indices = @transform_4, window_bounds = array<i64: 1, 32>}, {transform_indices = @transform_5, window_bounds = array<i64: 8, 32>}]} {
    %c0_i32 = arith.constant 0 : i32
    %0 = arith.cmpi eq, %arg1, %c0_i32 : i32
    %1 = arith.extui %0 : i1 to i32
    %c0_i32_0 = arith.constant 0 : i32
    %2 = arith.cmpi ne, %1, %c0_i32_0 : i32
    scf.if %2 {
      %cst_18 = arith.constant 0.000000e+00 : f32
      %33 = vector.broadcast %cst_18 : f32 to vector<8x32xf32>
      %c0_19 = arith.constant 0 : index
      %c0_20 = arith.constant 0 : index
      %34 = vector.load %arg8[%c0_19, %c0_20] : memref<8x32xf32, #tpu.memory_space<vmem>>, vector<8x32xf32>
      tpu.vector_store %arg8[%c0_19, %c0_20], %33 {strides = array<i32>} : memref<8x32xf32, #tpu.memory_space<vmem>>, vector<8x32xf32>,
    } else {
    }
    %c0 = arith.constant 0 : index
    %c0_1 = arith.constant 0 : index
    %3 = vector.load %arg2[%c0, %c0_1] : memref<8x32xf32, #tpu.memory_space<vmem>>, vector<8x32xf32>
    %c0_2 = arith.constant 0 : index
    %c0_3 = arith.constant 0 : index
    %4 = vector.load %arg3[%c0_2, %c0_3] : memref<32x128xf32, #tpu.memory_space<vmem>>, vector<32x128xf32>
    %cst = arith.constant dense<0.000000e+00> : vector<8x128xf32>
    %5 = tpu.matmul %3, %4, %cst {dimension_numbers = #tpu.dot_dimension_numbers<[1], [0], [0], [1], [0, 0, 1, 1], [], []>} : vector<8x32xf32>, vector<32x128xf32>, vector<8x128xf32> -> vector<8x128xf32>
    %c128_i32 = arith.constant 128 : i32
    %6 = arith.muli %arg1, %c128_i32 : i32
    %7 = tpu.assume_multiple %6, 128 : i32
    %c0_4 = arith.constant 0 : index
    %8 = arith.index_cast %7 : i32 to index
    %9 = vector.load %arg4[%c0_4, %8] : memref<1x128xf32, #tpu.memory_space<vmem>>, vector<1x128xf32>
    %10 = vector.broadcast %9 : vector<1x128xf32> to vector<8x128xf32>
    %11 = arith.addf %5, %10 : vector<8x128xf32>
    %cst_5 = arith.constant 5.000000e-01 : f32
    %12 = vector.broadcast %cst_5 : f32 to vector<8x128xf32>
    %13 = arith.mulf %12, %11 : vector<8x128xf32>
    %cst_6 = arith.constant 4.471500e-02 : f32
    %14 = vector.broadcast %cst_6 : f32 to vector<8x128xf32>
    %15 = arith.mulf %14, %11 : vector<8x128xf32>
    %16 = arith.mulf %15, %11 : vector<8x128xf32>
    %17 = arith.mulf %16, %11 : vector<8x128xf32>
    %18 = arith.addf %11, %17 : vector<8x128xf32>
    %cst_7 = arith.constant 0.797884583 : f32
    %19 = vector.broadcast %cst_7 : f32 to vector<8x128xf32>
    %20 = arith.mulf %19, %18 : vector<8x128xf32>
    %21 = math.tanh %20 : vector<8x128xf32>
    %cst_8 = arith.constant 1.000000e+00 : f32
    %22 = vector.broadcast %cst_8 : f32 to vector<8x128xf32>
    %23 = arith.addf %22, %21 : vector<8x128xf32>
    %24 = arith.mulf %13, %23 : vector<8x128xf32>
    %c0_9 = arith.constant 0 : index
    %c0_10 = arith.constant 0 : index
    %25 = vector.load %arg8[%c0_9, %c0_10] : memref<8x32xf32, #tpu.memory_space<vmem>>, vector<8x32xf32>
    %c0_11 = arith.constant 0 : index
    %c0_12 = arith.constant 0 : index
    %26 = vector.load %arg5[%c0_11, %c0_12] : memref<128x32xf32, #tpu.memory_space<vmem>>, vector<128x32xf32>
    %cst_13 = arith.constant dense<0.000000e+00> : vector<8x32xf32>
    %27 = tpu.matmul %24, %26, %cst_13 {dimension_numbers = #tpu.dot_dimension_numbers<[1], [0], [0], [1], [0, 0, 1, 1], [], []>} : vector<8x128xf32>, vector<128x32xf32>, vector<8x32xf32> -> vector<8x32xf32>
    %28 = arith.addf %25, %27 : vector<8x32xf32>
    %c0_14 = arith.constant 0 : index
    %c0_15 = arith.constant 0 : index
    %29 = vector.load %arg8[%c0_14, %c0_15] : memref<8x32xf32, #tpu.memory_space<vmem>>, vector<8x32xf32>
    tpu.vector_store %arg8[%c0_14, %c0_15], %28 {strides = array<i32>} : memref<8x32xf32, #tpu.memory_space<vmem>>, vector<8x32xf32>,
    %c0_i32_16 = arith.constant 0 : i32
    %30 = arith.cmpi eq, %arg1, %c0_i32_16 : i32
    %31 = arith.extui %30 : i1 to i32
    %c0_i32_17 = arith.constant 0 : i32
    %32 = arith.cmpi ne, %31, %c0_i32_17 : i32
    scf.if %32 {
      %c0_18 = arith.constant 0 : index
      %c0_19 = arith.constant 0 : index
      %33 = vector.load %arg8[%c0_18, %c0_19] : memref<8x32xf32, #tpu.memory_space<vmem>>, vector<8x32xf32>
      %c0_20 = arith.constant 0 : index
      %c0_21 = arith.constant 0 : index
      %34 = vector.load %arg6[%c0_20, %c0_21] : memref<1x32xf32, #tpu.memory_space<vmem>>, vector<1x32xf32>
      %35 = vector.broadcast %34 : vector<1x32xf32> to vector<8x32xf32>
      %36 = arith.addf %33, %35 : vector<8x32xf32>
      %c0_22 = arith.constant 0 : index
      %c0_23 = arith.constant 0 : index
      %37 = vector.load %arg7[%c0_22, %c0_23] : memref<8x32xf32, #tpu.memory_space<vmem>>, vector<8x32xf32>
      tpu.vector_store %arg7[%c0_22, %c0_23], %36 {strides = array<i32>} : memref<8x32xf32, #tpu.memory_space<vmem>>, vector<8x32xf32>,
    } else {
    }
    return
  }
  func.func @transform_0(%arg0: i32, %arg1: i32) -> (i32, i32) {
    %c0_i32 = arith.constant 0 : i32
    %c0_i32_0 = arith.constant 0 : i32
    return %arg0, %c0_i32 : i32, i32
  }
  func.func @transform_1(%arg0: i32, %arg1: i32) -> (i32, i32) {
    %c0_i32 = arith.constant 0 : i32
    %c0_i32_0 = arith.constant 0 : i32
    return %c0_i32, %arg1 : i32, i32
  }
  func.func @transform_2(%arg0: i32, %arg1: i32) -> (i32, i32) {
    %c0_i32 = arith.constant 0 : i32
    %c0_i32_0 = arith.constant 0 : i32
    %c0_i32_1 = arith.constant 0 : i32
    return %c0_i32, %c0_i32_0 : i32, i32
  }
  func.func @transform_3(%arg0: i32, %arg1: i32) -> (i32, i32) {
    %c0_i32 = arith.constant 0 : i32
    %c0_i32_0 = arith.constant 0 : i32
    return %arg1, %c0_i32 : i32, i32
  }
  func.func @transform_4(%arg0: i32, %arg1: i32) -> (i32, i32) {
    %c0_i32 = arith.constant 0 : i32
    %c0_i32_0 = arith.constant 0 : i32
    %c0_i32_1 = arith.constant 0 : i32
    return %c0_i32, %c0_i32_0 : i32, i32
  }
  func.func @transform_5(%arg0: i32, %arg1: i32) -> (i32, i32) {
    %c0_i32 = arith.constant 0 : i32
    %c0_i32_0 = arith.constant 0 : i32
    return %arg0, %c0_i32 : i32, i32
  }
}

</mosaic_0001>

<bundles_post_ra>
// kernel: tpu_custom_call.1
= control target key start
LH: loop header
LB: loop body
LE: loop exit
PB: predicated region body
PF: predicated region fallthrough
CT: control target
= control target key end

     0   :  { %10 = vsyncpa [#allocation4], 0  ;;  %s1036_s0 = inlined_call_operand.vmem [shape: f32[16,32], index: 0, kind: input, shape index: {}]   ;;  %s1037_s1 = inlined_call_operand.vmem [shape: f32[32,128], index: 1, kind: input, shape index: {}]   ;;  %s1038_s2 = inlined_call_operand.vmem [shape: f32[1,128], index: 2, kind: input, shape index: {}]   ;;  %s1039_s3 = inlined_call_operand.vmem [shape: f32[128,32], index: 3, kind: input, shape index: {}]   ;;  %s1040_s4 = inlined_call_operand.vmem [shape: f32[1,32], index: 4, kind: input, shape index: {}]   ;;  %s1041_s5 = inlined_call_operand.hbm [shape: f32[16,32], index: 5, kind: output, shape index: {}]  }
   0x1   :  { %12 = vsyncpa [#allocation4 + $0x1], 0  ;;  %s844_s18 = smov 0   ;;  %s846_s19 = smov 0  }
   0x2   :  { %s848_s20 = smov 0   ;;  %s850_s21 = smov 0  }
   0x3   :  { %s852_s22 = smov 0   ;;  %s854_s23 = smov 0  }
   0x4 LB: > { %s590_s24 = sadd.s32 4294967295, %s809_s23   ;;  %s591_s25 = sadd.s32 4294967294, %s809_s23   ;;  %s809_s23 = sphi %s854_s23, %s18_s23   ;;  %s805_s22 = sphi %s852_s22, %s1048_s22   ;;  %s801_s21 = sphi %s850_s21, %s1047_s21   ;;  %s797_s20 = sphi %s848_s20, %s1046_s20   ;;  %s793_s19 = sphi %s846_s19, %s1045_s19   ;;  %s789_s18 = sphi %s844_s18, %s1044_s18  }
   0x5   : > { %s30_s26 = sadd.s32 1, %s805_s22  ;;  %s157_s27 = sadd.s32 1, %s797_s20 }
   0x6   : > { %p32_p0 = scmp.ge.s32.totalorder %s30_s26, 2  ;;  %p167_p1 = scmp.ne.s32.totalorder %s797_s20, %s793_s19 }
   0x7   : > { %p168_p2 = scmp.eq.s32.totalorder %s590_s24, 1  ;;  %p173_p3 = scmp.ne.s32.totalorder %s793_s19, %s789_s18 }
   0x8   : > { %s1050_s26 = smov (%p32_p0, %s30_s26), 0  ;;  %p174_p5 = scmp.eq.s32.totalorder %s591_s25, 1 }
   0x9   : > { %p884_p4 = por %p168_p2, %p167_p1  ;;  %s154_s29 = ssub.s32 %s805_s22, %s1050_s26 }
   0xa   : > { %p596_p6 = scmp.ge.s32.totalorder %s809_s23, 1  ;;  %p155_p7 = scmp.eq.s32.totalorder %s154_s29, 0 }
   0xb   : > { %p891_p8 = por %p174_p5, %p173_p3  ;;  %p221_p9 = scmp.lt.s32.totalorder %s809_s23, 3 }
   0xc   : > { %s897_s6 = scalar_select %p155_p7, %s797_s20, %s157_s27  }
   0xd   : > { %p222_p10 = pnand %p596_p6, %p221_p9 }
   0xe   : > { %p257_p11 = scmp.lt.s32.totalorder (!%p222_p10), %s801_s21, 1  ;;  %s254_s9 = sand.u32 (!%p222_p10), 1, %s793_s19  }
   0xf   : > { %225 = sbr.rel (%p222_p10) target bundleno = 470 (0x1d6), region = 40  ;;  %s597_s10 = sshll.u32 (!%p222_p10), %s254_s9, 3 }
  0x10   : > { %s603_s13 = sshll.u32 (!%p222_p10), %s801_s21, 7  ;;  %s813_s29 = smov (!%p222_p10), [#allocation3]  }
  0x11   : > { %s490_s24 = scalar_lea.hbm (!%p222_p10), %s1041_s5, %s603_s13  ;;  %s737_s7 = sshll.u32 (!%p222_p10), %s813_s29, 4  ;;  %s738_s7 = int_to_ptr.vmem [resolvable:$false] %s737_s7 }
  0x14   : > { %v281_v0 = vld [vmem:[%s1037_s1 + $0x18] sm:$0xff]  ;;  %v811_v1 = vmov 0.0   ;;  %v280_v2 = vld [vmem:[%s1037_s1 + $0x10] sm:$0xff]  ;;  %vm812_vm0 = vmmov 0   ;;  %vm275_vm1 = vcmask 261120   ;;  %s258_s11 = scalar_select %p257_p11, %s801_s21, 1 }
  0x15   : > { %628 = vmatprep.subr.mxu0 %v811_v1  ;;  %636 = vmatprep.mubr.msk.f32.mxu0 %vm812_vm0, %v811_v1  ;;  %276 = vst.msk [vmem:[#allocation2] sm:$0xff] %vm275_vm1, %v811_v1  ;;  %v279_v3 = vld [vmem:[%s1037_s1 + $0x8] sm:$0xff]  ;;  %v278_v4 = vld [vmem:[%s1037_s1] sm:$0xff]  ;;  %v392_v6 = vld [vmem:[%s1039_s3 + $0x78] sm:$0xff]  ;;  %s739_s21 = scalar_lea.vmem %s738_s7, 256 }
  0x16   : > { %629 = vmatpush3.msra.mxu0 %v281_v0  ;;  %639 = vmatprep.subr.mxu1 %v811_v1  ;;  %s598_s14 = sshll.u32 %s258_s11, 3  ;;  %v391_v7 = vld [vmem:[%s1039_s3 + $0x70] sm:$0xff]  ;;  %v390_v8 = vld [vmem:[%s1039_s3 + $0x68] sm:$0xff]  ;;  %v389_v9 = vld [vmem:[%s1039_s3 + $0x60] sm:$0xff] }
  0x17   : > { %630 = vmatprep.subr.mxu0 %v811_v1  ;;  %671 = vmatprep.mubr.msk.f32.mxu1 %vm812_vm0, %v811_v1  ;;  %s260_s25 = scalar_lea.vmem %s1036_s0, %s598_s14  ;;  %v388_v10 = vld [vmem:[%s1039_s3 + $0x58] sm:$0xff]  ;;  %v387_v11 = vld [vmem:[%s1039_s3 + $0x50] sm:$0xff]  ;;  %v386_v12 = vld [vmem:[%s1039_s3 + $0x48] sm:$0xff]  ;;  %s256_s14 = scalar_lea.vmem [#allocation3], %s597_s10 }
  0x18   : > { %631 = vmatpush3.msra.mxu0 %v280_v2  ;;  %v277_v5 = vld [vmem:[%s260_s25] sm:$0xff]  ;;  %640 = vmatpush3.msra.mxu1 %v392_v6  ;;  %v384_v14 = vld [vmem:[%s1039_s3 + $0x38] sm:$0xff]  ;;  %v383_v15 = vld [vmem:[%s1039_s3 + $0x30] sm:$0xff]  ;;  %s492_s15 = sshll.u32 %s256_s14, 4  ;;  %s479_s25 = scalar_lea.sflag [#allocation4], %s254_s9  ;;  %s493_s15 = int_to_ptr.vmem [resolvable:$true] %s492_s15 }
  0x19   : > { %632 = vmatprep.subr.mxu0 %v811_v1  ;;  %641 = vmatprep.subr.mxu1 %v811_v1  ;;  %v385_v13 = vld [vmem:[%s1039_s3 + $0x40] sm:$0xff]  ;;  %v382_v16 = vld [vmem:[%s1039_s3 + $0x28] sm:$0xff]  ;;  %v380_v18 = vld [vmem:[%s1039_s3 + $0x18] sm:$0xff]  ;;  %s733_s27 = scalar_lea.vmem %s493_s15, 128  ;;  %p740_p1 = scmp.lt.s32.totalorder %s493_s15, %s738_s7 }
  0x1a   : > { %633 = vmatpush3.msra.mxu0 %v279_v3  ;;  %642 = vmatpush3.msra.mxu1 %v391_v7  ;;  %v381_v17 = vld [vmem:[%s1039_s3 + $0x20] sm:$0xff]  ;;  %v379_v19 = vld [vmem:[%s1039_s3 + $0x10] sm:$0xff]  ;;  %v378_v20 = vld [vmem:[%s1039_s3 + $0x8] sm:$0xff]  ;;  %p734_p12 = scmp.ne.s32.totalorder %s493_s15, %s733_s27  ;;  %p741_p2 = scmp.lt.s32.totalorder %s739_s21, %s733_s27 }
  0x1b   : > { %634 = vmatprep.subr.mxu0 %v811_v1  ;;  %643 = vmatprep.subr.mxu1 %v811_v1  ;;  %v377_v21 = vld [vmem:[%s1039_s3] sm:$0xff] }
  0x1c   : > { %635 = vmatpush3.msra.mxu0 %v278_v4  ;;  %644 = vmatpush3.msra.mxu1 %v390_v8  ;;  %v599_v22 = vld [vmem:[%s1038_s2] ss:$0 sm:$0xff]  ;;  %p735_p13 = pnand %p734_p12, %p884_p4  ;;  %p742_p3 = por %p741_p2, %p740_p1 }
  0x1d   : > { %637 = vmatmul.mubr.msk.f32.vlgmr.msra.gmra.mxu0 %vm275_vm1, %v277_v5  ;;  %645 = vmatprep.subr.mxu1 %v811_v1  ;;  %v376_v35 = vld [vmem:[#allocation2] sm:$0xff] }
  0x1e   : > { %646 = vmatpush3.msra.mxu1 %v389_v9  ;;  %v601_v39 = vld [vmem:[%s1040_s4] ss:$0 sm:$0xff]  ;;  %p736_p0 = pneg %p735_p13 }
  0x1f   : > { %647 = vmatprep.subr.mxu1 %v811_v1 }
  0x20   : > { %648 = vmatpush3.msra.mxu1 %v388_v10  ;;  %p743_p5 = pnand %p742_p3, %p736_p0 }
  0x21   : > { %649 = vmatprep.subr.mxu1 %v811_v1 }
  0x22   : > { %650 = vmatpush3.msra.mxu1 %v387_v11 }
  0x23   : > { %651 = vmatprep.subr.mxu1 %v811_v1 }
  0x24   : > { %652 = vmatpush3.msra.mxu1 %v386_v12 }
  0x25   : > { %653 = vmatprep.subr.mxu1 %v811_v1 }
  0x26   : > { %654 = vmatpush3.msra.mxu1 %v385_v13 }
  0x27   : > { %655 = vmatprep.subr.mxu1 %v811_v1 }
  0x28   : > { %656 = vmatpush3.msra.mxu1 %v384_v14 }
  0x29   : > { %657 = vmatprep.subr.mxu1 %v811_v1 }
  0x2a   : > { %658 = vmatpush3.msra.mxu1 %v383_v15 }
  0x2b   : > { %659 = vmatprep.subr.mxu1 %v811_v1 }
  0x2c   : > { %660 = vmatpush3.msra.mxu1 %v382_v16 }
  0x2d   : > { %661 = vmatprep.subr.mxu1 %v811_v1 }
  0x2e   : > { %662 = vmatpush3.msra.mxu1 %v381_v17 }
  0x2f   : > { %663 = vmatprep.subr.mxu1 %v811_v1 }
  0x30   : > { %664 = vmatpush3.msra.mxu1 %v380_v18 }
  0x31   : > { %665 = vmatprep.subr.mxu1 %v811_v1 }
  0x32   : > { %666 = vmatpush3.msra.mxu1 %v379_v19 }
  0x33   : > { %667 = vmatprep.subr.mxu1 %v811_v1 }
  0x34   : > { %668 = vmatpush3.msra.mxu1 %v378_v20 }
  0x35   : > { %669 = vmatprep.subr.mxu1 %v811_v1 }
  0x36   : > { %670 = vmatpush3.msra.mxu1 %v377_v21 }
  0xdd   : > { %v363_v23 = vpop.f32.mrf.mxu0 }
  0xde   : > { %v364_v24 = vadd.f32 %v599_v22, %v363_v23 }
  0xdf   : > { %v638_v25 = vpop.f32.mrf.mxu0 }
  0xe0   : > { %v368_v26 = vmul.f32 0.044715, %v364_v24  ;;  %v367_v32 = vmul.f32 0.5, %v364_v24 }
  0xe2   : > { %v369_v27 = vmul.f32 %v368_v26, %v364_v24 }
  0xe4   : > { %v370_v28 = vmul.f32 %v369_v27, %v364_v24 }
  0xe6   : > { %v371_v29 = vadd.f32 %v370_v28, %v364_v24 }
  0xe8   : > { %v372_v30 = vmul.f32 0.7978846, %v371_v29 }
  0xea   : > { %731 = vtanh.f32 %v372_v30 }
  0xf7   : > { %v732_v31 = vpop.eup %731 }
  0xf8   : > { %v374_v33 = vadd.f32 1.0, %v732_v31 }
  0xfa   : > { %v375_v34 = vmul.f32 %v374_v33, %v367_v32 }
  0xfc   : > { %672 = vmatmul.mubr.f32.vlgmr.msra.gmra.mxu1 %v375_v34 }
 0x1bc   : > { %v459_v36 = vpop.f32.mrf.mxu1 }
 0x1bd   : > { %v463_v37 = vadd.f32 %v459_v36, %v376_v35 }
 0x1be   : > { %v673_v38 = vpop.f32.mrf.mxu1 }
 0x1bf   : > { %464 = vst.msk [vmem:[#allocation2] sm:$0xff] %vm275_vm1, %v463_v37 }
 0x1c6   : > { %v468_v40 = vld [vmem:[#allocation2] sm:$0xff] }
 0x1c7   : > { %v476_v41 = vadd.f32 %v601_v39, %v468_v40 }
 0x1c9   : > { %477 = vst.msk [vmem:[%s256_s14] sm:$0xff] %vm275_vm1, %v476_v41 }
 0x1ca   : > { %746 = shalt.err (!%p743_p5)
}
 0x1cb   : > { %s747_s8 = scalar_lea.hbm %s490_s24, 128  ;;  %s751_s11 = scalar_lea.hbm %s1041_s5, 256 }
 0x1cc   : > { %p748_p6 = scmp.ne.s32.totalorder %s490_s24, %s747_s8  ;;  %p752_p10 = scmp.lt.s32.totalorder %s490_s24, %s1041_s5 }
 0x1cd   : > { %p753_p11 = scmp.lt.s32.totalorder %s751_s11, %s747_s8 }
 0x1ce   : > { %p749_p7 = pnand %p748_p6, %p884_p4 }
 0x1cf   : > { %p754_p12 = por %p753_p11, %p752_p10 }
 0x1d0   : > { %p750_p9 = pneg %p749_p7 }
 0x1d2   : > { %p755_p13 = pnand %p754_p12, %p750_p9 }
 0x1d4   : > { %758 = shalt.err (!%p755_p13)
}
 0x1d5   : > { %674 = dma.vmem_to_hbm [thread:$0]  (%p884_p4), %s493_s15, 128, %s490_s24, %s479_s25  }
 0x1d6 PF: > { %p680_p0 = scmp.ge.s32.totalorder %s809_s23, 2  ;;  %s504_s14 = sand.u32 1, %s789_s18  }
 0x1d7   : > { %s505_s16 = scalar_lea.sflag [#allocation4], %s504_s14 }
 0x1d8   : > { %p677_p1 = pnand %p680_p0, %p891_p8 }
 0x1da   : > { %p678_p2 = pneg %p677_p1 }
 0x1dc   : > { %784 = dma.done.wait (%p678_p2), %s505_s16, 128  }
 0x1dd   : > { %786 = vsyncadd (%p678_p2), %s505_s16, 4294967168  ;;  %s18_s23 = sadd.s32 1, %s809_s23   ;;  %s1044_s18 = smov %s793_s19 }
 0x1de   : > { %p15_p3 = scmp.ge.s32.totalorder %s18_s23, 4   ;;  %s1045_s19 = smov %s797_s20 }
 0x1df   : > { %s1046_s20 = smov %s897_s6  ;;  %s1047_s21 = smov %s805_s22 }
 0x1e0   : > { %s1048_s22 = smov %s1050_s26  ;;  %17 = sbr.rel (!%p15_p3) target bundleno = 4 (0x4), region = 90 }
 0x1e5   :  { %510 = vsyncpa [#allocation4], 1 }
 0x1e6   :  { %512 = vsyncpa [#allocation4 + $0x1], 1 }

</bundles_post_ra>
